<compile_context>
chip_gen: v6e
topology: v6e:2x2x1
jax: 0.10.0
libtpu: 0.0.40
codegen_flags: <defaults>
</compile_context>

<pallas_src>
import math
import functools

import jax
import jax.numpy as jnp
from jax import lax
from jax.experimental import pallas as pl
from jax.experimental.pallas import tpu as pltpu


def make_positional_encoding_table(d_model: int, max_len: int = 5000) -> jnp.ndarray:
    """Deterministic pe buffer, identical to the PyTorch __init__ math.

    Returns pe with shape [max_len, 1, d_model] (float32).
    """
    assert d_model % 2 == 0, "d_model must be even (as in the reference module)"
    position = jnp.arange(max_len, dtype=jnp.float32)[:, None]               # [max_len, 1]
    div_term = jnp.exp(
        jnp.arange(0, d_model, 2, dtype=jnp.float32) * (-math.log(10000.0) / d_model)
    )                                                                        # [d_model/2]
    pe = jnp.zeros((max_len, d_model), dtype=jnp.float32)
    pe = pe.at[:, 0::2].set(jnp.sin(position * div_term))
    pe = pe.at[:, 1::2].set(jnp.cos(position * div_term))
    return pe[:, None, :]                                                    # [max_len, 1, d_model]


def _pick_tile_s(S: int, per_row_bytes: int,
                 budget_bytes: int = 12 << 20, max_rows_cap: int = 2048) -> int:
    """Largest sequence tile that (a) divides S, (b) fits the VMEM budget
    (x-in + out + pe blocks, double-buffered), (c) keeps the sublane dim a
    multiple of 8 when possible."""
    max_rows = max(1, min(S, max_rows_cap, budget_bytes // max(per_row_bytes, 1)))
    best = 0
    t = 8
    while t <= max_rows:                      # 8-aligned divisors of S
        if S % t == 0:
            best = t
        t += 8
    if best:
        return best
    if S <= max_rows:                         # whole axis fits; full-dim block is legal
        return S
    best = 1                                  # rare fallback (S not 8-divisible and large)
    for t in range(2, int(max_rows) + 1):
        if S % t == 0:
            best = t
    return best


def _posenc_kernel(seed_ref, x_ref, pe_ref, o_ref, *, batch, p_dropout, training):
    ts, bd = x_ref.shape                                   # (tile_s, B*D)
    d = bd // batch
    # pe block is (tile_s, D); tile along lanes so column b*D + d sees pe[., d]
    pe_full = jnp.tile(pe_ref[...], (1, batch))            # (tile_s, B*D)
    y = x_ref[...] + pe_full

    if training and p_dropout > 0.0:
        # Inverted dropout with a stateless per-element hash (lowbias32):
        # works on TPU and in interpret mode, no hardware PRNG state needed.
        base = pl.program_id(0).astype(jnp.uint32) * jnp.uint32(ts * bd)
        r = lax.broadcasted_iota(jnp.uint32, (ts, bd), 0)
        c = lax.broadcasted_iota(jnp.uint32, (ts, bd), 1)
        idx = base + r * jnp.uint32(bd) + c
        h = idx ^ (seed_ref[0].astype(jnp.uint32) * jnp.uint32(0x9E3779B9))
        h = (h ^ (h >> 16)) * jnp.uint32(0x7FEB352D)
        h = (h ^ (h >> 15)) * jnp.uint32(0x846CA68B)
        h = h ^ (h >> 16)
        # keep iff h >= p * 2^32  ->  P(keep) = 1 - p ; pure integer compare.
        thr = jnp.uint32(min(int(round(p_dropout * 4294967296.0)), 4294967295))
        keep = h >= thr
        inv_keep = jnp.asarray(1.0 / (1.0 - p_dropout), y.dtype)
        y = jnp.where(keep, y * inv_keep, jnp.zeros_like(y))

    o_ref[...] = y.astype(o_ref.dtype)


def positional_encoding_forward(x, pe, *, p_dropout=0.1, training=False,
                                seed=0, tile_s=None):
    """x: [S, B, D]; pe: [max_len, 1, D].  Returns [S, B, D]."""
    S, B, D = x.shape
    assert pe.shape[0] >= S and pe.shape[-1] == D
    dt = x.dtype
    itemsize = jnp.dtype(dt).itemsize

    # pe pre-cast to x.dtype (halves pe DMA for bf16 inputs); drop broadcast axis.
    pe_2d = pe[:S].reshape(S, D).astype(dt)                # (S, D)
    x_2d = x.reshape(S, B * D)                             # zero-copy, lane-dense view

    # VMEM-budget tile picker: 2x double-buffered (x block + out block + pe block).
    per_row = 2 * (2 * B * D + D) * itemsize
    if tile_s is None:
        tile_s = _pick_tile_s(S, per_row)
    assert S % tile_s == 0, "tile_s must divide S (no silent whole-array fallback)"
    grid = (S // tile_s,)

    kernel = functools.partial(_posenc_kernel, batch=B,
                               p_dropout=float(p_dropout), training=bool(training))
    seed_arr = jnp.asarray([seed], dtype=jnp.int32)

    cost = pl.CostEstimate(
        flops=S * B * D,
        transcendentals=0,
        bytes_accessed=2 * S * B * D * itemsize + S * D * itemsize,
    )

    out_2d = pl.pallas_call(
        kernel,
        out_shape=jax.ShapeDtypeStruct((S, B * D), dt),
        grid_spec=pltpu.PrefetchScalarGridSpec(
            num_scalar_prefetch=1,
            grid=grid,
            in_specs=[
                pl.BlockSpec((tile_s, B * D), lambda i, seed_ref: (i, 0)),
                pl.BlockSpec((tile_s, D), lambda i, seed_ref: (i, 0)),
            ],
            out_specs=pl.BlockSpec((tile_s, B * D), lambda i, seed_ref: (i, 0)),
        ),
        compiler_params=pltpu.CompilerParams(
            # Iterations are independent -> lets v7x shard tiles across its 2 TCs.
            dimension_semantics=("parallel",),
            vmem_limit_bytes=32 * 1024 * 1024,
        ),
        cost_estimate=cost,
    )(seed_arr, x_2d, pe_2d)

    return out_2d.reshape(S, B, D)


if __name__ == "__main__":
    # Small shapes consistent with the forward: x is [seq, batch, d_model].
    S, B, D = 8, 2, 32
    max_len = 64

    key = jax.random.PRNGKey(0)
    x = jax.random.normal(key, (S, B, D), dtype=jnp.float32)
    pe = make_positional_encoding_table(D, max_len)

    # Eval-mode forward (dropout is identity), deterministic.
    out = positional_encoding_forward(x, pe, p_dropout=0.1, training=False)
    out = jax.block_until_ready(out)

    ref = x + pe[:S]
    assert out.shape == (S, B, D)
    assert jnp.allclose(out, ref, atol=1e-6), "mismatch vs reference (eval mode)"

    # Training-mode (dropout) path: every element is either exactly 0 (dropped)
    # or (x + pe) / (1 - p) (kept, inverted-dropout scaling).
    p = 0.1
    out_train = positional_encoding_forward(x, pe, p_dropout=p, training=True, seed=123)
    out_train = jax.block_until_ready(out_train)
    scaled = ref / (1.0 - p)
    ok = (out_train == 0) | jnp.isclose(out_train, scaled, rtol=1e-5, atol=1e-6)
    assert bool(jnp.all(ok)), "dropout output not in {0, (x+pe)/(1-p)}"

    print("KERNEL_OK")
</pallas_src>

<mosaic_0001>
module attributes {stable_mosaic.version = 11 : i64} {
  func.func @_posenc_kernel(%arg0: i32, %arg1: memref<1xi32, #tpu.memory_space<smem>>, %arg2: memref<8x64xf32, #tpu.memory_space<vmem>>, %arg3: memref<8x32xf32, #tpu.memory_space<vmem>>, %arg4: memref<8x64xf32, #tpu.memory_space<vmem>>) attributes {dimension_semantics = [#tpu.dimension_semantics<parallel>], iteration_bounds = array<i64: 1>, scalar_prefetch = 1 : i64, scratch_operands = 0 : i64, tpu.core_type = #tpu.core_type<tc>, window_params = [{transform_indices = @transform_0, window_bounds = array<i64: 8, 64>}, {transform_indices = @transform_1, window_bounds = array<i64: 8, 32>}, {transform_indices = @transform_2, window_bounds = array<i64: 8, 64>}]} {
    %c0 = arith.constant 0 : index
    %c0_0 = arith.constant 0 : index
    %0 = vector.load %arg3[%c0, %c0_0] : memref<8x32xf32, #tpu.memory_space<vmem>>, vector<8x32xf32>
    %1 = tpu.concatenate %0, %0 in 1 : vector<8x32xf32>, vector<8x32xf32> -> vector<8x64xf32>
    %c0_1 = arith.constant 0 : index
    %c0_2 = arith.constant 0 : index
    %2 = vector.load %arg2[%c0_1, %c0_2] : memref<8x64xf32, #tpu.memory_space<vmem>>, vector<8x64xf32>
    %3 = arith.addf %2, %1 : vector<8x64xf32>
    %c0_3 = arith.constant 0 : index
    %c0_4 = arith.constant 0 : index
    %4 = vector.load %arg4[%c0_3, %c0_4] : memref<8x64xf32, #tpu.memory_space<vmem>>, vector<8x64xf32>
    tpu.vector_store %arg4[%c0_3, %c0_4], %3 {strides = array<i32>} : memref<8x64xf32, #tpu.memory_space<vmem>>, vector<8x64xf32>,
    return
  }
  func.func @transform_0(%arg0: i32, %arg1: memref<1xi32, #tpu.memory_space<smem>>) -> (i32, i32) {
    %c0_i32 = arith.constant 0 : i32
    %c0_i32_0 = arith.constant 0 : i32
    return %arg0, %c0_i32 : i32, i32
  }
  func.func @transform_1(%arg0: i32, %arg1: memref<1xi32, #tpu.memory_space<smem>>) -> (i32, i32) {
    %c0_i32 = arith.constant 0 : i32
    %c0_i32_0 = arith.constant 0 : i32
    return %arg0, %c0_i32 : i32, i32
  }
  func.func @transform_2(%arg0: i32, %arg1: memref<1xi32, #tpu.memory_space<smem>>) -> (i32, i32) {
    %c0_i32 = arith.constant 0 : i32
    %c0_i32_0 = arith.constant 0 : i32
    return %arg0, %c0_i32 : i32, i32
  }
}

</mosaic_0001>

<bundles_post_ra>
// kernel: tpu_custom_call.1
= control target key start
LH: loop header
LB: loop body
LE: loop exit
PB: predicated region body
PF: predicated region fallthrough
CT: control target
= control target key end

     0   :  { %9 = vsyncpa [#allocation5], 0  ;;  %s168_s0 = inlined_call_operand.<no memory space> [shape: s32[1], index: 0, kind: input, shape index: {}]   ;;  %s169_s1 = inlined_call_operand.hbm [shape: f32[8,64], index: 1, kind: input, shape index: {}]   ;;  %s170_s2 = inlined_call_operand.hbm [shape: f32[8,32], index: 2, kind: input, shape index: {}]   ;;  %s171_s3 = inlined_call_operand.hbm [shape: f32[8,64], index: 3, kind: output, shape index: {}]  }
   0x1   :  { %10 = vsyncpa [#allocation8], 0 }
   0x2   :  { %11 = vsyncpa [#allocation6], 0  ;;  %s135_s12 = smov [#allocation4]   ;;  %s136_s14 = smov [#allocation7]  }
   0x3   :  { %s18_s13 = sshll.u32 %s135_s12, 4  ;;  %s28_s15 = sshll.u32 %s136_s14, 4  ;;  %s19_s13 = int_to_ptr.vmem [resolvable:$true] %s18_s13  ;;  %s29_s15 = int_to_ptr.vmem [resolvable:$true] %s28_s15 }
   0x4   :  { %s77_s16 = scalar_lea.vmem %s19_s13, 128  ;;  %p82_p1 = scmp.lt.s32.totalorder %s19_s13, %s19_s13 }
   0x5   :  { %p78_p0 = scmp.ne.s32.totalorder %s19_s13, %s77_s16  ;;  %p83_p2 = scmp.lt.s32.totalorder %s77_s16, %s77_s16 }
   0x7   :  { %p84_p3 = por %p83_p2, %p82_p1 }
   0x9   :  { %p85_p4 = pnand %p84_p3, %p78_p0 }
   0xb   :  { %88 = shalt.err (!%p85_p4)
}
   0xc   :  { %21 = dma.hbm_to_vmem [thread:$0]  %s169_s1, 128, %s19_s13, [#allocation5]  }
   0xd   :  { %s97_s18 = scalar_lea.vmem %s29_s15, 128  ;;  %p102_p6 = scmp.lt.s32.totalorder %s29_s15, %s29_s15 }
   0xe   :  { %p98_p5 = scmp.ne.s32.totalorder %s29_s15, %s97_s18  ;;  %p103_p7 = scmp.lt.s32.totalorder %s97_s18, %s97_s18 }
  0x10   :  { %p104_p8 = por %p103_p7, %p102_p6 }
  0x12   :  { %p105_p9 = pnand %p104_p8, %p98_p5 }
  0x14   :  { %108 = shalt.err (!%p105_p9)
}
  0x15   :  { %31 = dma.hbm_to_vmem [thread:$0]  %s170_s2, 128, %s29_s15, [#allocation8]  }
  0x16   :  { %129 = dma.done.wait [#allocation5], 128  }
  0x17   :  { %130 = vsyncadd [#allocation5], 4294967168 }
  0x18   :  { %131 = dma.done.wait [#allocation8], 128  }
  0x19   :  { %132 = vsyncadd [#allocation8], 4294967168  ;;  %v38_v0 = vld [vmem:[#allocation7] sm:$0xff]  ;;  %s137_s21 = smov 32   ;;  %vm43_vm0 = vcmask 261120   ;;  %v45_v1 = vld [vmem:[#allocation4] sm:$0xff] }
  0x1a   :  { %40 = vrot.lane.b32.xlu0 %v38_v0, %s137_s21  ;;  %s138_s1 = smov [#allocation9]   ;;  %vm47_vm1 = vcmask 523264  }
  0x1b   :  { %s55_s22 = sshll.u32 %s138_s1, 4  ;;  %s56_s22 = int_to_ptr.vmem [resolvable:$true] %s55_s22 }
  0x1c   :  { %s109_s23 = scalar_lea.vmem %s56_s22, 128  ;;  %p114_p11 = scmp.lt.s32.totalorder %s56_s22, %s56_s22 }
  0x1d   :  { %p110_p10 = scmp.ne.s32.totalorder %s56_s22, %s109_s23  ;;  %p115_p12 = scmp.lt.s32.totalorder %s109_s23, %s109_s23 }
  0x1f   :  { %p116_p13 = por %p115_p12, %p114_p11 }
  0x21   :  { %p117_p0 = pnand %p116_p13, %p110_p10 }
  0x8c   :  { %v41_v2 = vpop.permute.xlu0 %40 }
  0x8d   :  { %v44_v3 = vsel %vm43_vm0, %v38_v0, %v41_v2 }
  0x8e   :  { %v46_v4 = vadd.f32 %v45_v1, %v44_v3 }
  0x90   :  { %48 = vst.msk [vmem:[#allocation9] sm:$0xff] %vm47_vm1, %v46_v4 }
  0x91   :  { %120 = shalt.err (!%p117_p0)
}
  0x92   :  { %58 = dma.vmem_to_hbm [thread:$0]  %s56_s22, 128, %s171_s3, [#allocation6]  }
  0x93   :  { %133 = dma.done.wait [#allocation6], 128  }
  0x94   :  { %134 = vsyncadd [#allocation6], 4294967168 }
  0x95   :  { %62 = vsyncpa [#allocation5], 1 }
  0x96   :  { %63 = vsyncpa [#allocation8], 1 }
  0x97   :  { %64 = vsyncpa [#allocation6], 1 }

</bundles_post_ra>
